<compile_context>
chip_gen: v5e
topology: v5e:2x2
jax: 0.10.0
libtpu: 0.0.40
codegen_flags: <defaults>
</compile_context>

<pallas_src>
import functools

import jax
import jax.numpy as jnp
from jax.experimental import pallas as pl
from jax.experimental.pallas import tpu as pltpu


def _global_avg_pool_kernel(x_ref, o_ref, *, inv_hw):
    # x_ref: (tb, tc, H, W) VMEM tile; o_ref: (1, tb, tc)
    # Fold the f32 widening into the reduction (no f32 copy of the whole tile);
    # two single-axis reduces (lane, then new lane) lower cleanly on Mosaic.
    s = jnp.sum(x_ref[...], axis=-1, dtype=jnp.float32)   # (tb, tc, H)
    s = jnp.sum(s, axis=-1)                               # (tb, tc), f32
    o_ref[0] = (s * inv_hw).astype(o_ref.dtype)           # single VPU multiply


def _round_up(x, m):
    return ((x + m - 1) // m) * m


def _cdiv(a, b):
    return (a + b - 1) // b


def _vmem_capacity_bytes():
    try:
        return int(pltpu.get_tpu_info().vmem_capacity_bytes)
    except Exception:
        return 64 << 20  # conservative fallback (v7x per-TensorCore)


def _choose_tiling(n, c, h, w, itemsize, target_tile_bytes):
    """Pick (tb, tc) so the *padded* input tile is ~target_tile_bytes.

    Padded VMEM footprint of one (tb, tc, H, W) block:
        tb * tc * round_up(H, 8) * round_up(W, 128) * itemsize
    (only the last two dims tile to (8, 128); leading dims are unpadded).
    """
    slab = _round_up(h, 8) * _round_up(w, 128) * itemsize   # one padded (H, W) plane
    per_sample = c * slab

    # Channel chunking only when a single sample exceeds the budget. Chunks are
    # multiples of 128 so the (tb, tc) output block stays a legal block shape.
    tc = c
    if per_sample > target_tile_bytes and c > 128:
        tc = max(128, (target_tile_bytes // slab) // 128 * 128)
        tc = min(tc, c)
    per_chunk = tc * slab
    # (If C <= 128 and the spatial extent is enormous, per_chunk can exceed the
    #  target; vmem_limit below is sized from the real padded tile, so this
    #  stays correct — it only loses some pipelining headroom in that corner.)

    tb = max(1, target_tile_bytes // per_chunk)
    tb = min(tb, n)

    # Keep >= 2 grid steps so both v7x TensorCores can pick up work
    # (harmless on single-TensorCore v5e/v6e).
    if tb >= n and _cdiv(c, tc) == 1 and n >= 2:
        tb = _cdiv(n, 2)
    return int(tb), int(tc)


def global_avg_pool2d(x, *, target_tile_bytes=None):
    """Pallas equivalent of F.avg_pool2d(x, kernel_size=x.shape[2:])."""
    N, C, H, W = x.shape
    HW = H * W
    itemsize = jnp.dtype(x.dtype).itemsize

    vmem_cap = _vmem_capacity_bytes()
    if target_tile_bytes is None:
        # ~12 MiB padded tiles: close to HBM roofline on v5e/v6e/v7x while the
        # double-buffered pair stays ~24 MiB (fits v7x's 64 MiB VMEM easily and
        # leaves v5e/v6e's 128 MiB mostly free).
        two_buf_budget = min(int(vmem_cap * 0.45), 48 << 20)
        target_tile_bytes = max(4 << 20, min(two_buf_budget // 2, 12 << 20))

    tb, tc = _choose_tiling(N, C, H, W, itemsize, target_tile_bytes)
    nb, nc = _cdiv(N, tb), _cdiv(C, tc)
    grid = (nb, nc)

    # Scoped-VMEM request with (8,128)-padded accounting for in/out tiles,
    # double-buffered, plus slack; capped generation-aware at 70% of physical.
    slab = _round_up(H, 8) * _round_up(W, 128) * itemsize
    in_tile = tb * tc * slab
    out_tile = _round_up(tb, 8) * _round_up(tc, 128) * itemsize
    vmem_needed = 2 * in_tile + 2 * out_tile + (2 << 20)
    vmem_limit = int(min(max(vmem_needed, 16 << 20), int(vmem_cap * 0.7)))

    out_padded = pl.pallas_call(
        functools.partial(_global_avg_pool_kernel, inv_hw=float(1.0 / HW)),
        # Padded (nb, tb, C) output: the block's last two dims equal full array
        # dims (or a 128-multiple), so any tb (even 3) is a legal block shape.
        out_shape=jax.ShapeDtypeStruct((nb, tb, C), x.dtype),
        grid=grid,
        in_specs=[pl.BlockSpec((tb, tc, H, W), lambda n, c: (n, c, 0, 0))],
        out_specs=pl.BlockSpec((1, tb, tc), lambda n, c: (n, 0, c)),
        compiler_params=pltpu.CompilerParams(
            dimension_semantics=("parallel", "parallel"),
            vmem_limit_bytes=vmem_limit,
        ),
    )(x)

    # (nb, tb, C) -> (N, C, 1, 1). Rows past N come from the overhanging last
    # batch block (garbage reads, harmless) and are sliced off here; the
    # reshapes act on a tiny N*C-sized array, so they are negligible.
    out = out_padded.reshape(nb * tb, C)[:N]
    return out.reshape(N, C, 1, 1)


if __name__ == "__main__":
    key = jax.random.PRNGKey(0)

    # 1) Main case consistent with the module's forward pass (NCHW).
    x = jax.random.normal(key, (2, 4, 16, 16), dtype=jnp.float32)
    y = jax.block_until_ready(global_avg_pool2d(x))
    y_ref = jnp.mean(x, axis=(2, 3), keepdims=True)
    assert y.shape == (2, 4, 1, 1)
    assert jnp.allclose(y, y_ref, atol=1e-6, rtol=1e-6)

    # 2) Batch tile that does not divide N (exercises the padded-output slice).
    x2 = jax.random.normal(jax.random.PRNGKey(1), (3, 4, 8, 8), dtype=jnp.float32)
    y2 = jax.block_until_ready(global_avg_pool2d(x2, target_tile_bytes=32 * 1024))
    assert jnp.allclose(y2, jnp.mean(x2, axis=(2, 3), keepdims=True), atol=1e-6, rtol=1e-6)

    # 3) Channel chunking path (tc = 128 multiple) for oversized per-sample tiles.
    x3 = jax.random.normal(jax.random.PRNGKey(2), (2, 256, 8, 8), dtype=jnp.float32)
    y3 = jax.block_until_ready(global_avg_pool2d(x3, target_tile_bytes=600_000))
    assert jnp.allclose(y3, jnp.mean(x3, axis=(2, 3), keepdims=True), atol=1e-6, rtol=1e-6)

    print("KERNEL_OK")
</pallas_src>

<mosaic_0001>
module attributes {stable_mosaic.version = 11 : i64} {
  func.func @_global_avg_pool_kernel(%arg0: i32, %arg1: i32, %arg2: memref<1x4x16x16xf32, #tpu.memory_space<vmem>>, %arg3: memref<1x1x4xf32, #tpu.memory_space<vmem>>) attributes {dimension_semantics = [#tpu.dimension_semantics<parallel>, #tpu.dimension_semantics<parallel>], iteration_bounds = array<i64: 2, 1>, scalar_prefetch = 0 : i64, scratch_operands = 0 : i64, tpu.core_type = #tpu.core_type<tc>, window_params = [{transform_indices = @transform_0, window_bounds = array<i64: 1, 4, 16, 16>}, {transform_indices = @transform_1, window_bounds = array<i64: 1, 1, 4>}]} {
    %c0 = arith.constant 0 : index
    %c0_0 = arith.constant 0 : index
    %c0_1 = arith.constant 0 : index
    %c0_2 = arith.constant 0 : index
    %0 = vector.load %arg2[%c0, %c0_0, %c0_1, %c0_2] : memref<1x4x16x16xf32, #tpu.memory_space<vmem>>, vector<1x4x16x16xf32>
    %cst = arith.constant dense<0.000000e+00> : vector<1x4x16xf32>
    %1 = vector.multi_reduction <add>, %0, %cst [3] : vector<1x4x16x16xf32> to vector<1x4x16xf32>
    %cst_3 = arith.constant dense<0.000000e+00> : vector<1x4xf32>
    %2 = vector.multi_reduction <add>, %1, %cst_3 [2] : vector<1x4x16xf32> to vector<1x4xf32>
    %cst_4 = arith.constant 3.906250e-03 : f32
    %3 = vector.broadcast %cst_4 : f32 to vector<1x4xf32>
    %4 = arith.mulf %2, %3 : vector<1x4xf32>
    %c0_5 = arith.constant 0 : index
    %c0_6 = arith.constant 0 : index
    %c0_7 = arith.constant 0 : index
    %5 = vector.load %arg3[%c0_5, %c0_6, %c0_7] : memref<1x1x4xf32, #tpu.memory_space<vmem>>, vector<1x1x4xf32>
    %6 = vector.shape_cast %5 : vector<1x1x4xf32> to vector<1x4xf32>
    %7 = vector.shape_cast %4 : vector<1x4xf32> to vector<1x1x4xf32>
    tpu.vector_store %arg3[%c0_5, %c0_6, %c0_7], %7 {strides = array<i32>} : memref<1x1x4xf32, #tpu.memory_space<vmem>>, vector<1x1x4xf32>,
    return
  }
  func.func @transform_0(%arg0: i32, %arg1: i32) -> (i32, i32, i32, i32) {
    %c0_i32 = arith.constant 0 : i32
    %c0_i32_0 = arith.constant 0 : i32
    %c0_i32_1 = arith.constant 0 : i32
    return %arg0, %arg1, %c0_i32, %c0_i32_0 : i32, i32, i32, i32
  }
  func.func @transform_1(%arg0: i32, %arg1: i32) -> (i32, i32, i32) {
    %c0_i32 = arith.constant 0 : i32
    %c0_i32_0 = arith.constant 0 : i32
    return %arg0, %c0_i32, %arg1 : i32, i32, i32
  }
}

</mosaic_0001>

<bundles_post_ra>
// kernel: tpu_custom_call.1
= control target key start
LH: loop header
LB: loop body
LE: loop exit
PB: predicated region body
PF: predicated region fallthrough
CT: control target
= control target key end

     0   :  { %6 = vsyncpa [#allocation3], 0  ;;  %s657_s0 = inlined_call_operand.hbm [shape: f32[2,4,16,16], index: 0, kind: input, shape index: {}]   ;;  %s658_s1 = inlined_call_operand.hbm [shape: f32[2,1,4], index: 1, kind: output, shape index: {}]  }
   0x1   :  { %8 = vsyncpa [#allocation3 + $0x1], 0 }
   0x2   :  { %9 = vsyncpa [#allocation4], 0 }
   0x3   :  { %11 = vsyncpa [#allocation4 + $0x1], 0  ;;  %s524_s6 = smov 0   ;;  %s526_s7 = smov 0  }
   0x4   :  { %s528_s8 = smov 0   ;;  %s530_s9 = smov 0  }
   0x5   :  { %s532_s10 = smov 0   ;;  %s534_s11 = smov 0  }
   0x6 LB: > { %s322_s12 = sadd.s32 4294967295, %s510_s11   ;;  %s323_s13 = sadd.s32 4294967294, %s510_s11   ;;  %s510_s11 = sphi %s534_s11, %s17_s11   ;;  %s506_s10 = sphi %s532_s10, %s667_s10   ;;  %s502_s9 = sphi %s530_s9, %s666_s9   ;;  %s498_s8 = sphi %s528_s8, %s665_s8   ;;  %s494_s7 = sphi %s526_s7, %s664_s7   ;;  %s490_s6 = sphi %s524_s6, %s663_s6  }
   0x7   : > { %s29_s14 = sadd.s32 1, %s506_s10  ;;  %s38_s15 = sadd.s32 1, %s498_s8 }
   0x8   : > { %p31_p0 = scmp.ge.s32.totalorder %s29_s14, 2  ;;  %p45_p1 = scmp.ne.s32.totalorder %s498_s8, %s494_s7 }
   0x9   : > { %p46_p2 = scmp.eq.s32.totalorder %s510_s11, 0  ;;  %p51_p3 = scmp.ne.s32.totalorder %s494_s7, %s490_s6 }
   0xa   : > { %s669_s14 = smov (%p31_p0, %s29_s14), 0  ;;  %p52_p5 = scmp.eq.s32.totalorder %s322_s12, 0 }
   0xb   : > { %p565_p4 = por %p46_p2, %p45_p1  ;;  %s33_s17 = ssub.s32 %s506_s10, %s669_s14 }
   0xc   : > { %p77_p6 = scmp.eq.s32.totalorder %s322_s12, 1  ;;  %p36_p7 = scmp.eq.s32.totalorder %s33_s17, 0 }
   0xd   : > { %p571_p8 = por %p52_p5, %p51_p3  ;;  %p83_p10 = scmp.eq.s32.totalorder %s323_s13, 1 }
   0xe   : > { %p575_p9 = por %p77_p6, %p45_p1  ;;  %p325_p12 = scmp.ge.s32.totalorder %s510_s11, 2 }
   0xf   : > { %s580_s20 = scalar_select %p36_p7, %s498_s8, %s38_s15  }
  0x10   : > { %p582_p11 = por %p83_p10, %p51_p3  ;;  %p346_p13 = scmp.lt.s32.totalorder %s510_s11, 2 }
  0x11   : > { %s103_s22 = sand.u32 1, %s498_s8   ;;  %s333_s24 = sshll.u32 %s506_s10, 6 }
  0x12   : > { %s326_s23 = sshll.u32 %s103_s22, 6  ;;  %s115_s27 = scalar_lea.hbm %s657_s0, %s333_s24 }
  0x13   : > { %s107_s28 = scalar_lea.vmem [#allocation2], %s326_s23  ;;  %s116_s30 = sshll.u32 %s115_s27, 4  ;;  %s117_s30 = int_to_ptr.hbm [resolvable:$true] %s116_s30 }
  0x14   : > { %s118_s29 = sshll.u32 %s107_s28, 4  ;;  %p339_p0 = pnand %p346_p13, %p565_p4  ;;  %s119_s29 = int_to_ptr.vmem [resolvable:$true] %s118_s29 }
  0x15   : > { %p329_p1 = scmp.ge.s32.totalorder %s510_s11, 1  ;;  %s104_s2 = scalar_lea.sflag [#allocation3], %s103_s22 }
  0x16   : > { %s512_s3 = smov 128   ;;  %s513_s4 = smov 8  }
  0x17   : > { %341 = dma.hbm_to_vmem [thread:$0]  (!%p339_p0), %s117_s30, 1024, %s119_s29, %s104_s2, %s512_s3, %s512_s3, %s513_s4  }
  0x18   : > { %p126_p2 = scmp.lt.s32.totalorder %s510_s11, 3 }
  0x1a   : > { %p127_p3 = pnand %p329_p1, %p126_p2 }
  0x1b   : > { %s598_s5 = sand.u32 (!%p127_p3), 1, %s494_s7  }
  0x1c   : > { %130 = sbr.rel (%p127_p3) target bundleno = 297 (0x129), region = 24  ;;  %s330_s12 = sshll.u32 (!%p127_p3), %s598_s5, 6 }
  0x1d   : > { %s133_s13 = scalar_lea.sflag (!%p127_p3), [#allocation3], %s598_s5  ;;  %s136_s15 = scalar_lea.vmem (!%p127_p3), [#allocation2], %s330_s12 }
  0x21   : > { %481 = dma.done.wait (%p571_p8), %s133_s13, 1024  }
  0x22   : > { %483 = vsyncadd (%p571_p8), %s133_s13, 4294966272  ;;  %vm164_vm0 = vcmask 130048   ;;  %v160_v0 = vld [vmem:[%s136_s15 + $0x20] sm:$0xff]  ;;  %v158_v1 = vld [vmem:[%s136_s15 + $0x10] sm:$0xff]  ;;  %v197_v16 = vlaneseq  ;;  %vm202_vm1 = vcmask 130112   ;;  %vm213_vm2 = vcmask 1041409   ;;  %s240_s18 = scalar_lea.hbm %s658_s1, %s502_s9 }
  0x23   : > { %v156_v2 = vld [vmem:[%s136_s15] sm:$0xff]  ;;  %v177_v3 = vsel %vm164_vm0, %v160_v0, 0.0  ;;  %v171_v4 = vsel %vm164_vm0, %v158_v1, 0.0  ;;  %v161_v6 = vld [vmem:[%s136_s15 + $0x28] sm:$0xff]  ;;  %v159_v7 = vld [vmem:[%s136_s15 + $0x18] sm:$0xff]  ;;  %vm215_vm3 = vcmask 1042434  }
  0x24   : > { %v165_v5 = vsel %vm164_vm0, %v156_v2, 0.0  ;;  %178 = vadd.xlane.f32.xlu2 %v177_v3  ;;  %172 = vadd.xlane.f32.xlu1 %v171_v4  ;;  %v157_v8 = vld [vmem:[%s136_s15 + $0x8] sm:$0xff]  ;;  %v180_v9 = vsel %vm164_vm0, %v161_v6, 0.0  ;;  %v174_v10 = vsel %vm164_vm0, %v159_v7, 0.0  ;;  %v163_v12 = vld [vmem:[%s136_s15 + $0x38] sm:$0xff]  ;;  %v162_v13 = vld [vmem:[%s136_s15 + $0x30] sm:$0xff] }
  0x25   : > { %166 = vadd.xlane.f32.xlu0 %v165_v5  ;;  %v168_v11 = vsel %vm164_vm0, %v157_v8, 0.0  ;;  %v186_v14 = vsel %vm164_vm0, %v163_v12, 0.0  ;;  %v183_v15 = vsel %vm164_vm0, %v162_v13, 0.0  ;;  %v198_v20 = vand.u32 127, %v197_v16  ;;  %s154_s22 = scalar_lea.vmem [#allocation5], %s598_s5  ;;  %s244_s24 = sshll.u32 %s240_s18, 4  ;;  %s245_s24 = int_to_ptr.hbm [resolvable:$true] %s244_s24 }
  0x26   : > { %vm217_vm4 = vcmask 1043459   ;;  %vm220_vm5 = vcmask 125952   ;;  %s242_s23 = sshll.u32 %s154_s22, 4  ;;  %vm228_vm6 = vcmask 24576   ;;  %s231_s25 = scalar_lea.sflag [#allocation4], %s598_s5  ;;  %s243_s23 = int_to_ptr.vmem [resolvable:$true] %s242_s23 }
  0x27   : > { %v200_v21 = vadd.s32 4294967288, %v198_v20  ;;  %s442_s26 = sshra.s32 %s245_s24, 4  ;;  %s448_s29 = scalar_lea.hbm %s658_s1, 2  ;;  %s443_s26 = int_to_ptr.hbm [resolvable:$true] %s442_s26 }
  0x28   : > { %s444_s27 = scalar_lea.hbm %s443_s26, 1  ;;  %p449_p7 = scmp.lt.s32.totalorder %s443_s26, %s658_s1 }
  0x29   : > { %p445_p4 = scmp.ne.s32.totalorder %s443_s26, %s444_s27  ;;  %p450_p8 = scmp.lt.s32.totalorder %s448_s29, %s444_s27 }
  0x2b   : > { %p446_p5 = pnand %p445_p4, %p575_p9  ;;  %p451_p10 = por %p450_p8, %p449_p7 }
  0x2c   : > { %181 = vadd.xlane.f32.xlu2 %v180_v9  ;;  %175 = vadd.xlane.f32.xlu1 %v174_v10 }
  0x2d   : > { %169 = vadd.xlane.f32.xlu0 %v168_v11  ;;  %p447_p6 = pneg %p446_p5 }
  0x2f   : > { %p452_p13 = pnand %p451_p10, %p447_p6 }
  0x34   : > { %187 = vadd.xlane.f32.xlu1 %v186_v14 }
  0x35   : > { %184 = vadd.xlane.f32.xlu0 %v183_v15 }
  0x97   : > { %v179_v17 = vpop.xlane.xlu2 %178  ;;  %v173_v18 = vpop.xlane.xlu1 %172 }
  0x98   : > { %v167_v19 = vpop.xlane.xlu0 %166  ;;  %v204_v27 = vperm.slane %v173_v18, %v198_v20  ;;  %v207_v29 = vperm.slane %v179_v17, %v198_v20 }
  0x99   : > { %v199_v28 = vperm.slane %v167_v19, %v198_v20 }
  0x9f   : > { %v176_v22 = vpop.xlane.xlu1 %175  ;;  %v182_v24 = vpop.xlane.xlu2 %181 }
  0xa0   : > { %v170_v23 = vpop.xlane.xlu0 %169  ;;  %v205_v25 = vperm.slane %v176_v22, %v200_v21  ;;  %v208_v30 = vperm.slane %v182_v24, %v200_v21 }
  0xa1   : > { %v201_v26 = vperm.slane %v170_v23, %v200_v21 }
  0xa2   : > { %v206_v31 = vsel %vm202_vm1, %v205_v25, %v204_v27  ;;  %v209_v34 = vsel %vm202_vm1, %v208_v30, %v207_v29 }
  0xa3   : > { %v203_v32 = vsel %vm202_vm1, %v201_v26, %v199_v28 }
  0xa4   : > { %v214_v37 = vsel %vm213_vm2, %v206_v31, %v203_v32 }
  0xa5   : > { %v216_v40 = vsel %vm215_vm3, %v209_v34, %v214_v37 }
  0xa7   : > { %v188_v33 = vpop.xlane.xlu1 %187 }
  0xa8   : > { %v211_v35 = vperm.slane %v188_v33, %v200_v21  ;;  %v185_v36 = vpop.xlane.xlu0 %184 }
  0xa9   : > { %v210_v38 = vperm.slane %v185_v36, %v198_v20 }
  0xab   : > { %v212_v39 = vsel %vm202_vm1, %v211_v35, %v210_v38 }
  0xac   : > { %v218_v41 = vsel %vm217_vm4, %v212_v39, %v216_v40 }
  0xad   : > { %v221_v42 = vsel %vm220_vm5, %v218_v41, 0.0 }
  0xae   : > { %222 = vadd.xlane.f32.xlu2 %v221_v42 }
 0x121   : > { %v223_v43 = vpop.xlane.xlu2 %222 }
 0x122   : > { %v224_v44 = vmul.f32 0.00390625, %v223_v43 }
 0x124   : > { %v226_v45 = vperm.slane %v224_v44, %v198_v20 }
 0x126   : > { %229 = vst.msk [vmem:[%s154_s22] sm:$0x1] %vm228_vm6, %v226_v45 }
 0x127   : > { %455 = shalt.err (!%p452_p13)
}
 0x128   : > { %336 = dma.vmem_to_hbm [thread:$0]  (%p575_p9), %s243_s23, 16, %s245_s24, %s231_s25  }
 0x129 PF: > { %s256_s3 = sand.u32 1, %s490_s6   ;;  %p343_p0 = pnand %p325_p12, %p582_p11 }
 0x12a   : > { %s257_s4 = scalar_lea.sflag [#allocation4], %s256_s3 }
 0x12b   : > { %p344_p1 = pneg %p343_p0 }
 0x12d   : > { %485 = dma.done.wait (%p344_p1), %s257_s4, 16  }
 0x12e   : > { %487 = vsyncadd (%p344_p1), %s257_s4, 4294967280  ;;  %s17_s11 = sadd.s32 1, %s510_s11   ;;  %s663_s6 = smov %s494_s7 }
 0x12f   : > { %p14_p2 = scmp.ge.s32.totalorder %s17_s11, 4   ;;  %s664_s7 = smov %s498_s8 }
 0x130   : > { %s665_s8 = smov %s580_s20  ;;  %s666_s9 = smov %s506_s10 }
 0x131   : > { %s667_s10 = smov %s669_s14  ;;  %16 = sbr.rel (!%p14_p2) target bundleno = 6 (0x6), region = 69 }
 0x136   :  { %262 = vsyncpa [#allocation3], 1 }
 0x137   :  { %264 = vsyncpa [#allocation3 + $0x1], 1 }
 0x138   :  { %265 = vsyncpa [#allocation4], 1 }
 0x139   :  { %267 = vsyncpa [#allocation4 + $0x1], 1 }

</bundles_post_ra>
